<compile_context>
chip_gen: v7x
topology: tpu7x:2x2x1
jax: 0.10.0
libtpu: 0.0.40
codegen_flags: <defaults>
</compile_context>

<pallas_src>
import functools

import jax
import jax.numpy as jnp
from jax import lax
from jax.experimental import pallas as pl
from jax.experimental.pallas import tpu as pltpu

# Model dims (deterministic synthetic config; TRM.py typically uses 512/2048,
# kept small but TPU-tile-friendly here)
D_MODEL = 128
D_FF = 256
LN_EPS = 1e-5


def _ffn_kernel(x_ref, w1_ref, b1_ref, w2_ref, b2_ref, gamma_ref, beta_ref, o_ref,
                *, d_ff, ff_chunk):
    # One row-tile of tokens: (TM, d_model), bf16 on the wire; residual path in f32.
    x_bf16 = x_ref[...]
    x_f32 = x_bf16.astype(jnp.float32)

    # Hoist the small (1, D)-shaped operands once per tile (no repeated broadcasts).
    b1 = b1_ref[...]
    b2 = b2_ref[...]
    gamma = gamma_ref[...]
    beta = beta_ref[...]

    # conv1 (1x1) + ReLU + conv2 (1x1), chunked over d_ff with f32 accumulation.
    # Static trip count -> unrolled at trace time; one chunk at the demo dims.
    n_chunks = d_ff // ff_chunk
    y = None
    for c in range(n_chunks):
        lo = c * ff_chunk
        h = jnp.dot(x_bf16, w1_ref[:, lo:lo + ff_chunk],
                    preferred_element_type=jnp.float32)
        h = jnp.maximum(h + b1[:, lo:lo + ff_chunk], 0.0)
        part = jnp.dot(h.astype(jnp.bfloat16), w2_ref[lo:lo + ff_chunk, :],
                       preferred_element_type=jnp.float32)
        y = part if y is None else y + part
    y = y + b2

    # residual + LayerNorm over last dim (d_model), f32, single-pass statistics.
    z = y + x_f32
    inv_d = 1.0 / z.shape[-1]
    mean = jnp.sum(z, axis=-1, keepdims=True) * inv_d
    ex2 = jnp.sum(z * z, axis=-1, keepdims=True) * inv_d
    var = ex2 - mean * mean
    norm = (z - mean) * lax.rsqrt(var + LN_EPS)
    o_ref[...] = (norm * gamma + beta).astype(o_ref.dtype)


def _choose_tile_m(rows, requested):
    """Largest row tile <= requested (multiple of 8); one grid step if rows fit.

    No forced >=2 grid steps: on single-TC v5e/v6e that only doubles per-step
    overhead, and on v7x any input large enough to benefit from 2-TC sharding
    already yields >=2 steps at the default TM.
    """
    rows8 = pl.cdiv(rows, 8) * 8
    tm = min(max(requested, 8), rows8)
    return max(8, (tm // 8) * 8)


def _default_vmem_limit_bytes():
    """~75% of this generation's VMEM: v7x 64MiB -> 48MiB; v5e/v6e 128MiB -> 96MiB."""
    try:
        cap = int(pltpu.get_tpu_info().vmem_capacity_bytes)
    except Exception:  # pragma: no cover - conservative fallback
        cap = 64 * 1024 * 1024
    return min(100 * 1024 * 1024, (cap * 3) // 4)


def poswise_ffn(x, w1, b1, w2, b2, gamma, beta, *,
                tile_m=1024, ff_chunk=512,
                single_buffer_weights=False,
                out_dtype=jnp.float32):
    """x: (B, S, d_model). w1/w2 bf16 (in, out); biases/gamma/beta f32 (1, dim).

    Returns (B, S, d_model) in `out_dtype` (f32 by default, matching the module).
    Set single_buffer_weights=True on v7x at TRM dims (512/2048) to reclaim the
    default double-buffer copies of the resident weights.
    """
    B, S, D = x.shape
    d_ff = w1.shape[1]
    rows = B * S

    # bf16 on the wire for x: halves the dominant HBM read in this mem-bound regime.
    x2 = x.reshape(rows, D).astype(jnp.bfloat16)

    tm = _choose_tile_m(rows, tile_m)
    padded_rows = pl.cdiv(rows, tm) * tm
    if padded_rows != rows:
        x2 = jnp.pad(x2, ((0, padded_rows - rows), (0, 0)))

    grid = (padded_rows // tm,)

    chunk = min(d_ff, ff_chunk)
    assert d_ff % chunk == 0 and chunk % 128 == 0, "d_ff chunk must be lane-aligned"

    def const_spec(shape):
        # Constant index_map -> resident in VMEM across the whole grid.
        if single_buffer_weights:
            return pl.BlockSpec(shape, lambda i: (0, 0), pipeline_mode=pl.Buffered(1))
        return pl.BlockSpec(shape, lambda i: (0, 0))

    out_bytes = padded_rows * D * jnp.dtype(out_dtype).itemsize
    bytes_accessed = (padded_rows * D * 2                       # x bf16 in
                      + out_bytes                               # output
                      + (w1.size + w2.size) * 2                 # bf16 weights
                      + (b1.size + b2.size + gamma.size + beta.size) * 4)
    cost = pl.CostEstimate(
        flops=4 * padded_rows * D * d_ff,        # two matmuls: 2*M*K*N each
        transcendentals=padded_rows,             # one rsqrt per row
        bytes_accessed=int(bytes_accessed),
    )

    kernel = functools.partial(_ffn_kernel, d_ff=d_ff, ff_chunk=chunk)

    out2 = pl.pallas_call(
        kernel,
        out_shape=jax.ShapeDtypeStruct((padded_rows, D), out_dtype),
        grid_spec=pltpu.PrefetchScalarGridSpec(
            num_scalar_prefetch=0,
            grid=grid,
            in_specs=[
                pl.BlockSpec((tm, D), lambda i: (i, 0)),   # x row-tile (bf16)
                const_spec((D, d_ff)),                     # W1 (in, out) bf16, resident
                const_spec((1, d_ff)),                     # b1
                const_spec((d_ff, D)),                     # W2 (in, out) bf16, resident
                const_spec((1, D)),                        # b2
                const_spec((1, D)),                        # ln gamma
                const_spec((1, D)),                        # ln beta
            ],
            out_specs=pl.BlockSpec((tm, D), lambda i: (i, 0)),
        ),
        compiler_params=pltpu.CompilerParams(
            dimension_semantics=("parallel",),
            vmem_limit_bytes=_default_vmem_limit_bytes(),
        ),
        cost_estimate=cost,
    )(x2, w1, b1, w2, b2, gamma, beta)

    return out2[:rows].reshape(B, S, D)


def _reference(x, w1, b1, w2, b2, gamma, beta):
    h = jnp.maximum(x @ w1 + b1, 0.0)
    y = h @ w2 + b2
    z = y + x
    mean = jnp.mean(z, axis=-1, keepdims=True)
    var = jnp.mean((z - mean) ** 2, axis=-1, keepdims=True)
    return (z - mean) / jnp.sqrt(var + LN_EPS) * gamma + beta


if __name__ == "__main__":
    key = jax.random.PRNGKey(0)
    kx, k1, kb1, k2, kb2, kx2 = jax.random.split(key, 6)

    # Conv1d(kernel_size=1) weights: PyTorch shape (out, in, 1); stored here
    # pre-transposed as (in, out).  f32 master copies for the reference,
    # bf16 copies for the MXU hot path.
    w1_f32 = jax.random.normal(k1, (D_MODEL, D_FF), dtype=jnp.float32) * 0.05
    b1 = jax.random.normal(kb1, (1, D_FF), dtype=jnp.float32) * 0.05
    w2_f32 = jax.random.normal(k2, (D_FF, D_MODEL), dtype=jnp.float32) * 0.05
    b2 = jax.random.normal(kb2, (1, D_MODEL), dtype=jnp.float32) * 0.05
    gamma = jnp.ones((1, D_MODEL), dtype=jnp.float32)   # PyTorch LayerNorm default init
    beta = jnp.zeros((1, D_MODEL), dtype=jnp.float32)
    w1 = w1_f32.astype(jnp.bfloat16)
    w2 = w2_f32.astype(jnp.bfloat16)

    # --- small correctness check (B=2, S=8) ---
    B, S = 2, 8
    x = jax.random.normal(kx, (B, S, D_MODEL), dtype=jnp.float32)
    out = jax.block_until_ready(poswise_ffn(x, w1, b1, w2, b2, gamma, beta))
    ref = _reference(x, w1_f32, b1, w2_f32, b2, gamma, beta)
    assert out.shape == (B, S, D_MODEL)
    # bf16 x/weights/h vs the pure-f32 reference -> loose-ish tolerance
    assert jnp.allclose(out, ref, atol=5e-2, rtol=5e-2), "mismatch vs reference (small)"

    # --- moderate-size check exercising the TM=1024 pipelined path (grid of 2) ---
    B2, S2 = 4, 512   # 2048 rows -> 2 tiles of 1024 (shardable across v7x's 2 TCs)
    xl = jax.random.normal(kx2, (B2, S2, D_MODEL), dtype=jnp.float32)
    out_l = jax.block_until_ready(poswise_ffn(xl, w1, b1, w2, b2, gamma, beta))
    ref_l = _reference(xl, w1_f32, b1, w2_f32, b2, gamma, beta)
    assert out_l.shape == (B2, S2, D_MODEL)
    assert jnp.allclose(out_l, ref_l, atol=5e-2, rtol=5e-2), "mismatch vs reference (tiled)"

    print("KERNEL_OK")
</pallas_src>

<mosaic_0001>
module attributes {stable_mosaic.version = 11 : i64} {
  func.func @_ffn_kernel(%arg0: i32, %arg1: memref<16x128xbf16, #tpu.memory_space<vmem>>, %arg2: memref<128x256xbf16, #tpu.memory_space<vmem>>, %arg3: memref<1x256xf32, #tpu.memory_space<vmem>>, %arg4: memref<256x128xbf16, #tpu.memory_space<vmem>>, %arg5: memref<1x128xf32, #tpu.memory_space<vmem>>, %arg6: memref<1x128xf32, #tpu.memory_space<vmem>>, %arg7: memref<1x128xf32, #tpu.memory_space<vmem>>, %arg8: memref<16x128xf32, #tpu.memory_space<vmem>>) attributes {dimension_semantics = [#tpu.dimension_semantics<parallel>], iteration_bounds = array<i64: 1>, scalar_prefetch = 0 : i64, scratch_operands = 0 : i64, tpu.core_type = #tpu.core_type<tc>, window_params = [{transform_indices = @transform_0, window_bounds = array<i64: 16, 128>}, {pipeline_mode = #tpu.pipeline_mode<synchronous>, transform_indices = @transform_1, window_bounds = array<i64: 128, 256>}, {pipeline_mode = #tpu.pipeline_mode<synchronous>, transform_indices = @transform_2, window_bounds = array<i64: 1, 256>}, {pipeline_mode = #tpu.pipeline_mode<synchronous>, transform_indices = @transform_3, window_bounds = array<i64: 256, 128>}, {pipeline_mode = #tpu.pipeline_mode<synchronous>, transform_indices = @transform_4, window_bounds = array<i64: 1, 128>}, {pipeline_mode = #tpu.pipeline_mode<synchronous>, transform_indices = @transform_5, window_bounds = array<i64: 1, 128>}, {pipeline_mode = #tpu.pipeline_mode<synchronous>, transform_indices = @transform_6, window_bounds = array<i64: 1, 128>}, {transform_indices = @transform_7, window_bounds = array<i64: 16, 128>}]} {
    %c0 = arith.constant 0 : index
    %c0_0 = arith.constant 0 : index
    %0 = vector.load %arg1[%c0, %c0_0] : memref<16x128xbf16, #tpu.memory_space<vmem>>, vector<16x128xbf16>
    %1 = arith.extf %0 : vector<16x128xbf16> to vector<16x128xf32>
    %c0_1 = arith.constant 0 : index
    %c0_2 = arith.constant 0 : index
    %2 = vector.load %arg3[%c0_1, %c0_2] : memref<1x256xf32, #tpu.memory_space<vmem>>, vector<1x256xf32>
    %c0_3 = arith.constant 0 : index
    %c0_4 = arith.constant 0 : index
    %3 = vector.load %arg5[%c0_3, %c0_4] : memref<1x128xf32, #tpu.memory_space<vmem>>, vector<1x128xf32>
    %c0_5 = arith.constant 0 : index
    %c0_6 = arith.constant 0 : index
    %4 = vector.load %arg6[%c0_5, %c0_6] : memref<1x128xf32, #tpu.memory_space<vmem>>, vector<1x128xf32>
    %c0_7 = arith.constant 0 : index
    %c0_8 = arith.constant 0 : index
    %5 = vector.load %arg7[%c0_7, %c0_8] : memref<1x128xf32, #tpu.memory_space<vmem>>, vector<1x128xf32>
    %c0_9 = arith.constant 0 : index
    %c0_10 = arith.constant 0 : index
    %6 = vector.load %arg2[%c0_9, %c0_10] : memref<128x256xbf16, #tpu.memory_space<vmem>>, vector<128x256xbf16>
    %cst = arith.constant dense<0.000000e+00> : vector<16x256xf32>
    %7 = tpu.matmul %0, %6, %cst {dimension_numbers = #tpu.dot_dimension_numbers<[1], [0], [0], [1], [0, 0, 1, 1], [], []>} : vector<16x128xbf16>, vector<128x256xbf16>, vector<16x256xf32> -> vector<16x256xf32>
    %8 = vector.broadcast %2 : vector<1x256xf32> to vector<16x256xf32>
    %9 = arith.addf %7, %8 : vector<16x256xf32>
    %cst_11 = arith.constant 0.000000e+00 : f32
    %10 = vector.broadcast %cst_11 : f32 to vector<16x256xf32>
    %11 = arith.maximumf %9, %10 : vector<16x256xf32>
    %12 = arith.truncf %11 : vector<16x256xf32> to vector<16x256xbf16>
    %c0_12 = arith.constant 0 : index
    %c0_13 = arith.constant 0 : index
    %13 = vector.load %arg4[%c0_12, %c0_13] : memref<256x128xbf16, #tpu.memory_space<vmem>>, vector<256x128xbf16>
    %cst_14 = arith.constant dense<0.000000e+00> : vector<16x128xf32>
    %14 = tpu.matmul %12, %13, %cst_14 {dimension_numbers = #tpu.dot_dimension_numbers<[1], [0], [0], [1], [0, 0, 1, 1], [], []>} : vector<16x256xbf16>, vector<256x128xbf16>, vector<16x128xf32> -> vector<16x128xf32>
    %15 = vector.broadcast %3 : vector<1x128xf32> to vector<16x128xf32>
    %16 = arith.addf %14, %15 : vector<16x128xf32>
    %17 = arith.addf %16, %1 : vector<16x128xf32>
    %cst_15 = arith.constant dense<0.000000e+00> : vector<16xf32>
    %18 = vector.multi_reduction <add>, %17, %cst_15 [1] : vector<16x128xf32> to vector<16xf32>
    %19 = vector.shape_cast %18 : vector<16xf32> to vector<16x1xf32>
    %cst_16 = arith.constant 7.812500e-03 : f32
    %20 = vector.broadcast %cst_16 : f32 to vector<16x1xf32>
    %21 = arith.mulf %19, %20 : vector<16x1xf32>
    %22 = arith.mulf %17, %17 : vector<16x128xf32>
    %cst_17 = arith.constant dense<0.000000e+00> : vector<16xf32>
    %23 = vector.multi_reduction <add>, %22, %cst_17 [1] : vector<16x128xf32> to vector<16xf32>
    %24 = vector.shape_cast %23 : vector<16xf32> to vector<16x1xf32>
    %cst_18 = arith.constant 7.812500e-03 : f32
    %25 = vector.broadcast %cst_18 : f32 to vector<16x1xf32>
    %26 = arith.mulf %24, %25 : vector<16x1xf32>
    %27 = arith.mulf %21, %21 : vector<16x1xf32>
    %28 = arith.subf %26, %27 : vector<16x1xf32>
    %29 = vector.broadcast %21 : vector<16x1xf32> to vector<16x128xf32>
    %30 = arith.subf %17, %29 : vector<16x128xf32>
    %cst_19 = arith.constant 9.99999974E-6 : f32
    %31 = vector.broadcast %cst_19 : f32 to vector<16x1xf32>
    %32 = arith.addf %28, %31 : vector<16x1xf32>
    %33 = math.rsqrt %32 : vector<16x1xf32>
    %34 = vector.broadcast %33 : vector<16x1xf32> to vector<16x128xf32>
    %35 = arith.mulf %30, %34 : vector<16x128xf32>
    %36 = vector.broadcast %4 : vector<1x128xf32> to vector<16x128xf32>
    %37 = arith.mulf %35, %36 : vector<16x128xf32>
    %38 = vector.broadcast %5 : vector<1x128xf32> to vector<16x128xf32>
    %39 = arith.addf %37, %38 : vector<16x128xf32>
    %c0_20 = arith.constant 0 : index
    %c0_21 = arith.constant 0 : index
    %40 = vector.load %arg8[%c0_20, %c0_21] : memref<16x128xf32, #tpu.memory_space<vmem>>, vector<16x128xf32>
    tpu.vector_store %arg8[%c0_20, %c0_21], %39 {strides = array<i32>} : memref<16x128xf32, #tpu.memory_space<vmem>>, vector<16x128xf32>,
    return
  }
  func.func @transform_0(%arg0: i32) -> (i32, i32) {
    %c0_i32 = arith.constant 0 : i32
    %c0_i32_0 = arith.constant 0 : i32
    return %arg0, %c0_i32 : i32, i32
  }
  func.func @transform_1(%arg0: i32) -> (i32, i32) {
    %c0_i32 = arith.constant 0 : i32
    %c0_i32_0 = arith.constant 0 : i32
    %c0_i32_1 = arith.constant 0 : i32
    return %c0_i32, %c0_i32_0 : i32, i32
  }
  func.func @transform_2(%arg0: i32) -> (i32, i32) {
    %c0_i32 = arith.constant 0 : i32
    %c0_i32_0 = arith.constant 0 : i32
    %c0_i32_1 = arith.constant 0 : i32
    return %c0_i32, %c0_i32_0 : i32, i32
  }
  func.func @transform_3(%arg0: i32) -> (i32, i32) {
    %c0_i32 = arith.constant 0 : i32
    %c0_i32_0 = arith.constant 0 : i32
    %c0_i32_1 = arith.constant 0 : i32
    return %c0_i32, %c0_i32_0 : i32, i32
  }
  func.func @transform_4(%arg0: i32) -> (i32, i32) {
    %c0_i32 = arith.constant 0 : i32
    %c0_i32_0 = arith.constant 0 : i32
    %c0_i32_1 = arith.constant 0 : i32
    return %c0_i32, %c0_i32_0 : i32, i32
  }
  func.func @transform_5(%arg0: i32) -> (i32, i32) {
    %c0_i32 = arith.constant 0 : i32
    %c0_i32_0 = arith.constant 0 : i32
    %c0_i32_1 = arith.constant 0 : i32
    return %c0_i32, %c0_i32_0 : i32, i32
  }
  func.func @transform_6(%arg0: i32) -> (i32, i32) {
    %c0_i32 = arith.constant 0 : i32
    %c0_i32_0 = arith.constant 0 : i32
    %c0_i32_1 = arith.constant 0 : i32
    return %c0_i32, %c0_i32_0 : i32, i32
  }
  func.func @transform_7(%arg0: i32) -> (i32, i32) {
    %c0_i32 = arith.constant 0 : i32
    %c0_i32_0 = arith.constant 0 : i32
    return %arg0, %c0_i32 : i32, i32
  }
}

</mosaic_0001>

<bundles_post_ra>
// kernel: tpu_custom_call.1
= control target key start
LH: loop header
LB: loop body
LE: loop exit
PB: predicated region body
PF: predicated region fallthrough
CT: control target
= control target key end

     0   :  { %12 = vsyncpa [#allocation3], 0  ;;  %s800_s0 = inlined_call_operand.hbm [shape: bf16[16,128], index: 0, kind: input, shape index: {}]   ;;  %s801_s1 = inlined_call_operand.hbm [shape: bf16[128,256], index: 1, kind: input, shape index: {}]   ;;  %s802_s2 = inlined_call_operand.vmem [shape: f32[1,256], index: 2, kind: input, shape index: {}]   ;;  %s803_s3 = inlined_call_operand.hbm [shape: bf16[256,128], index: 3, kind: input, shape index: {}]   ;;  %s804_s4 = inlined_call_operand.vmem [shape: f32[1,128], index: 4, kind: input, shape index: {}]   ;;  %s805_s5 = inlined_call_operand.vmem [shape: f32[1,128], index: 5, kind: input, shape index: {}]   ;;  %s806_s6 = inlined_call_operand.vmem [shape: f32[1,128], index: 6, kind: input, shape index: {}]   ;;  %s807_s7 = inlined_call_operand.hbm [shape: f32[16,128], index: 7, kind: output, shape index: {}]  }
   0x1   :  { %13 = vsyncpa [#allocation6], 0 }
   0x2   :  { %14 = vsyncpa [#allocation4], 0  ;;  %s685_s24 = smov [#allocation5]   ;;  %s591_s28 = scalar_lea.hbm %s801_s1, 2048 }
   0x3   :  { %s32_s25 = sshll.u32 %s685_s24, 4  ;;  %p592_p0 = scmp.ne.s32.totalorder %s801_s1, %s591_s28  ;;  %s33_s25 = int_to_ptr.vmem [resolvable:$true] %s32_s25 }
   0x4   :  { %p595_p1 = scmp.lt.u32.totalorder %s591_s28, %s801_s1 }
   0x6   :  { %p597_p2 = pnand %p595_p1, %p592_p0 }
   0x8   :  { %600 = shalt.err (!%p597_p2)
}
   0x9   :  { %s601_s10 = scalar_lea.vmem %s33_s25, 2048  ;;  %p606_p4 = scmp.lt.s32.totalorder %s33_s25, %s33_s25 }
   0xa   :  { %p602_p3 = scmp.ne.s32.totalorder %s33_s25, %s601_s10  ;;  %p607_p5 = scmp.lt.s32.totalorder %s601_s10, %s601_s10 }
   0xc   :  { %p608_p6 = por %p607_p5, %p606_p4 }
   0xe   :  { %p609_p7 = pnand %p608_p6, %p602_p3 }
  0x10   :  { %612 = shalt.err (!%p609_p7)
}
  0x11   :  { %s686_s11 = smov 128   ;;  %s687_s12 = smov 8  }
  0x12   :  { %38 = dma.hbm_to_vmem [thread:$0]  %s801_s1, 2048, %s33_s25, [#allocation6], %s686_s11, %s686_s11, %s687_s12  }
  0x13   :  { %s688_s15 = smov [#allocation2]   ;;  %s613_s19 = scalar_lea.hbm %s800_s0, 128 }
  0x14   :  { %s20_s16 = sshll.u32 %s688_s15, 4  ;;  %p614_p8 = scmp.ne.s32.totalorder %s800_s0, %s613_s19  ;;  %s21_s16 = int_to_ptr.vmem [resolvable:$true] %s20_s16 }
  0x15   :  { %p617_p9 = scmp.lt.u32.totalorder %s613_s19, %s800_s0 }
  0x17   :  { %p619_p10 = pnand %p617_p9, %p614_p8 }
  0x19   :  { %622 = shalt.err (!%p619_p10)
}
  0x1a   :  { %s623_s24 = scalar_lea.vmem %s21_s16, 128  ;;  %p628_p12 = scmp.lt.s32.totalorder %s21_s16, %s21_s16 }
  0x1b   :  { %p624_p11 = scmp.ne.s32.totalorder %s21_s16, %s623_s24  ;;  %p629_p13 = scmp.lt.s32.totalorder %s623_s24, %s623_s24 }
  0x1d   :  { %p630_p0 = por %p629_p13, %p628_p12 }
  0x1f   :  { %p631_p1 = pnand %p630_p0, %p624_p11 }
  0x21   :  { %634 = shalt.err (!%p631_p1)
}
  0x22   :  { %s689_s1 = smov 64   ;;  %s690_s25 = smov 4  }
  0x23   :  { %26 = dma.hbm_to_vmem [thread:$0]  %s800_s0, 128, %s21_s16, [#allocation3], %s689_s1, %s689_s1, %s690_s25  }
  0x24   :  { %s691_s28 = smov [#allocation7]   ;;  %s635_s9 = scalar_lea.hbm %s803_s3, 2048 }
  0x25   :  { %s46_s29 = sshll.u32 %s691_s28, 4  ;;  %p636_p2 = scmp.ne.s32.totalorder %s803_s3, %s635_s9  ;;  %s47_s29 = int_to_ptr.vmem [resolvable:$true] %s46_s29 }
  0x26   :  { %p639_p3 = scmp.lt.u32.totalorder %s635_s9, %s803_s3 }
  0x28   :  { %p641_p4 = pnand %p639_p3, %p636_p2 }
  0x2a   :  { %644 = shalt.err (!%p641_p4)
}
  0x2b   :  { %s645_s17 = scalar_lea.vmem %s47_s29, 2048  ;;  %p650_p6 = scmp.lt.s32.totalorder %s47_s29, %s47_s29 }
  0x2c   :  { %p646_p5 = scmp.ne.s32.totalorder %s47_s29, %s645_s17  ;;  %p651_p7 = scmp.lt.s32.totalorder %s645_s17, %s645_s17 }
  0x2e   :  { %p652_p8 = por %p651_p7, %p650_p6 }
  0x30   :  { %p653_p9 = pnand %p652_p8, %p646_p5 }
  0x32   :  { %656 = shalt.err (!%p653_p9)
}
  0x33   :  { %52 = dma.hbm_to_vmem [thread:$0]  %s803_s3, 2048, %s47_s29, [#allocation6], %s689_s1, %s689_s1, %s690_s25  }
  0x34   :  { %679 = dma.done.wait [#allocation3], 128  }
  0x35   :  { %680 = vsyncadd [#allocation3], 4294967168 }
  0x36   :  { %681 = dma.done.wait [#allocation6], 4096  }
  0x37   :  { %682 = vsyncadd [#allocation6], 4294963200  ;;  %v692_v0 = vmov 0   ;;  %v545_v1 = vld [vmem:[#allocation5 + $0x4] ss:$8 sps:$4 sm:$0xff]   ;;  %v574_v15 = vld [vmem:[#allocation7 + $0x50] sm:$0xff]   ;;  %v94_v34 = vlaneseq }
  0x38   :  { %222 = vmatprep.mubr.bf16.mxu0 %v692_v0  ;;  %v547_v2 = vld [vmem:[#allocation5] ss:$8 sps:$4 sm:$0xff]   ;;  %190 = vmatprep.subr.bf16.mxu0 %v545_v1  ;;  %v548_v3 = vld [vmem:[#allocation5 + $0x14] ss:$8 sps:$4 sm:$0xff]   ;;  %v550_v4 = vld [vmem:[#allocation5 + $0x10] ss:$8 sps:$4 sm:$0xff]  }
  0x39   :  { %191 = vmatpush1.bf16.msra.mxu0 %v547_v2  ;;  %v551_v5 = vld [vmem:[#allocation5 + $0x24] ss:$8 sps:$4 sm:$0xff]   ;;  %v553_v6 = vld [vmem:[#allocation5 + $0x20] ss:$8 sps:$4 sm:$0xff]   ;;  %v554_v7 = vld [vmem:[#allocation5 + $0x34] ss:$8 sps:$4 sm:$0xff]  }
  0x3a   :  { %192 = vmatprep.subr.bf16.mxu0 %v548_v3  ;;  %v556_v8 = vld [vmem:[#allocation5 + $0x30] ss:$8 sps:$4 sm:$0xff]   ;;  %v557_v9 = vld [vmem:[#allocation5 + $0x44] ss:$8 sps:$4 sm:$0xff]   ;;  %v559_v12 = vld [vmem:[#allocation5 + $0x40] ss:$8 sps:$4 sm:$0xff]  }
  0x3b   :  { %v570_v10 = vld [vmem:[#allocation7 + $0x40] sm:$0xff]   ;;  %v572_v13 = vld [vmem:[#allocation7 + $0x48] sm:$0xff]   ;;  %v560_v16 = vld [vmem:[#allocation5 + $0x54] ss:$8 sps:$4 sm:$0xff]   ;;  %v95_v35 = vshrl.u32 %v94_v34, 7  ;;  %s693_s23 = smov [#allocation8]  }
  0x3c   :  { %v571_v11 = vld [vmem:[#allocation7] sm:$0xff]   ;;  %514 = vmatprep.subr.bf16.mxu1 %v570_v10  ;;  %v573_v14 = vld [vmem:[#allocation7 + $0x8] sm:$0xff]   ;;  %v562_v17 = vld [vmem:[#allocation5 + $0x50] ss:$8 sps:$4 sm:$0xff]   ;;  %s465_s24 = sshll.u32 %s693_s23, 4  ;;  %s466_s24 = int_to_ptr.vmem [resolvable:$true] %s465_s24 }
  0x3d   :  { %193 = vmatpush1.bf16.msra.mxu0 %v550_v4  ;;  %515 = vmatpush3.bf16.msra.mxu1 %v571_v11  ;;  %v575_v18 = vld [vmem:[#allocation7 + $0x10] sm:$0xff]   ;;  %v576_v19 = vld [vmem:[#allocation7 + $0x58] sm:$0xff]   ;;  %v563_v20 = vld [vmem:[#allocation5 + $0x64] ss:$8 sps:$4 sm:$0xff]   ;;  %v96_v36 = vsub.s32 0, %v95_v35  ;;  %v100_v38 = vsub.s32 1, %v95_v35  ;;  %p662_p11 = scmp.lt.s32.totalorder %s466_s24, %s466_s24 }
  0x3e   :  { %194 = vmatprep.subr.bf16.mxu0 %v551_v5  ;;  %516 = vmatprep.subr.bf16.mxu1 %v572_v13  ;;  %v565_v21 = vld [vmem:[#allocation5 + $0x60] ss:$8 sps:$4 sm:$0xff]   ;;  %v577_v22 = vld [vmem:[#allocation7 + $0x18] sm:$0xff]   ;;  %v582_v30 = vld [vmem:[#allocation7 + $0x70] sm:$0xff]   ;;  %s657_s1 = scalar_lea.vmem %s466_s24, 256 }
  0x3f   :  { %v566_v23 = vld [vmem:[#allocation5 + $0x74] ss:$8 sps:$4 sm:$0xff]   ;;  %v578_v24 = vld [vmem:[#allocation7 + $0x60] sm:$0xff]   ;;  %v568_v26 = vld [vmem:[#allocation5 + $0x70] ss:$8 sps:$4 sm:$0xff]   ;;  %p658_p10 = scmp.ne.s32.totalorder %s466_s24, %s657_s1  ;;  %p663_p12 = scmp.lt.s32.totalorder %s657_s1, %s657_s1 }
  0x40   :  { %v579_v25 = vld [vmem:[#allocation7 + $0x20] sm:$0xff]   ;;  %v69_v27 = vld [vmem:[#allocation2] sm:$0xff]   ;;  %v580_v28 = vld [vmem:[#allocation7 + $0x68] sm:$0xff]  }
  0x41   :  { %195 = vmatpush1.bf16.msra.mxu0 %v553_v6  ;;  %517 = vmatpush3.bf16.msra.mxu1 %v573_v14  ;;  %v581_v29 = vld [vmem:[#allocation7 + $0x28] sm:$0xff]   ;;  %v583_v31 = vld [vmem:[#allocation7 + $0x30] sm:$0xff]   ;;  %v584_v32 = vld [vmem:[#allocation7 + $0x78] sm:$0xff]   ;;  %v71_v60 = vunpack.c.l.bf16 %v69_v27  ;;  %v72_v0 = vunpack.c.h.bf16 %v69_v27  ;;  %p664_p13 = por %p663_p12, %p662_p11 }
  0x42   :  { %196 = vmatprep.subr.bf16.mxu0 %v554_v7  ;;  %518 = vmatprep.subr.bf16.mxu1 %v574_v15  ;;  %v585_v33 = vld [vmem:[#allocation7 + $0x38] sm:$0xff]  }
  0x43   :  { %v73_v37 = vld [vmem:[%s802_s2] sm:$0x3]  ;;  %p665_p0 = pnand %p664_p13, %p658_p10 }
  0x44   :  { %v97_v39 = vrot.slane %v73_v37, %v96_v36  ;;  %v101_v40 = vrot.slane %v73_v37, %v100_v38  ;;  %v495_v56 = vld [vmem:[%s804_s4] ss:$0 sm:$0xff] }
  0x45   :  { %197 = vmatpush1.bf16.msra.mxu0 %v556_v8  ;;  %519 = vmatpush3.bf16.msra.mxu1 %v575_v18 }
  0x46   :  { %198 = vmatprep.subr.bf16.mxu0 %v557_v9  ;;  %520 = vmatprep.subr.bf16.mxu1 %v576_v19 }
  0x49   :  { %199 = vmatpush1.bf16.msra.mxu0 %v559_v12  ;;  %521 = vmatpush3.bf16.msra.mxu1 %v577_v22  ;;  %v512_v22 = vld [vmem:[%s805_s5] ss:$0 sm:$0xff] }
  0x4a   :  { %200 = vmatprep.subr.bf16.mxu0 %v560_v16  ;;  %522 = vmatprep.subr.bf16.mxu1 %v578_v24  ;;  %v513_v24 = vld [vmem:[%s806_s6] ss:$0 sm:$0xff] }
  0x4d   :  { %201 = vmatpush1.bf16.msra.mxu0 %v562_v17  ;;  %523 = vmatpush3.bf16.msra.mxu1 %v579_v25 }
  0x4e   :  { %202 = vmatprep.subr.bf16.mxu0 %v563_v20  ;;  %524 = vmatprep.subr.bf16.mxu1 %v580_v28 }
  0x51   :  { %203 = vmatpush1.bf16.msra.mxu0 %v565_v21  ;;  %525 = vmatpush3.bf16.msra.mxu1 %v581_v29 }
  0x52   :  { %204 = vmatprep.subr.bf16.mxu0 %v566_v23  ;;  %526 = vmatprep.subr.bf16.mxu1 %v582_v30 }
  0x55   :  { %205 = vmatpush1.bf16.msra.mxu0 %v568_v26  ;;  %527 = vmatpush3.bf16.msra.mxu1 %v583_v31 }
  0x56   :  { %528 = vmatprep.subr.bf16.mxu1 %v584_v32 }
  0x58   :  { %223 = vmatmul.mubr.bf16.vlgmr.msra.gmra.mrb[0].mxu0 %v69_v27 }
  0x59   :  { %529 = vmatpush3.bf16.msra.mxu1 %v585_v33 }
 0x12b   :  { %v224_v41 = vpop.f32.mrb[0].mxu0 }
 0x12c   :  { %v225_v42 = vadd.f32 %v224_v41, %v97_v39  ;;  %v226_v43 = vpop.f32.mrb[1].mxu0 }
 0x12d   :  { %v227_v44 = vadd.f32 %v226_v43, %v101_v40  ;;  %v228_v45 = vpop.f32.mrb[2].mxu0 }
 0x12e   :  { %v229_v46 = vadd.f32 %v228_v45, %v97_v39  ;;  %v230_v47 = vpop.f32.mrb[3].mxu0  ;;  %v233_v49 = vmax.f32 %v225_v42, 0.0 }
 0x12f   :  { %v231_v48 = vadd.f32 %v230_v47, %v101_v40  ;;  %v234_v51 = vmax.f32 %v227_v44, 0.0 }
 0x130   :  { %v235_v50 = vmax.f32 %v229_v46, 0.0 }
 0x131   :  { %v236_v52 = vmax.f32 %v231_v48, 0.0 }
 0x132   :  { %v237_v53 = vpack.c.bf16 %v235_v50, %v233_v49 }
 0x133   :  { %v238_v54 = vpack.c.bf16 %v236_v52, %v234_v51 }
 0x135   :  { %405 = vmatprep.mubr.bf16.mxu1 %v238_v54 }
 0x136   :  { %406 = vmatmul.mubr.bf16.vlgmr.msra.gmra.mrb[0].mxu1 %v237_v53 }
 0x209   :  { %v530_v55 = vpop.f32.mrb[0].mxu1 }
 0x20a   :  { %v531_v57 = vpop.f32.mrb[1].mxu1 }
 0x20b   :  { %v532_v58 = vadd.f32 %v531_v57, %v530_v55  ;;  %v533_v59 = vpop.f32.mrb[2].mxu1 }
 0x20c   :  { %v534_v61 = vpop.f32.mrb[3].mxu1 }
 0x20d   :  { %v408_v62 = vadd.f32 %v532_v58, %v495_v56  ;;  %v535_v63 = vadd.f32 %v534_v61, %v533_v59 }
 0x20f   :  { %v411_v1 = vadd.f32 %v535_v63, %v495_v56  ;;  %v414_v2 = vadd.f32 %v408_v62, %v71_v60 }
 0x211   :  { %416 = vadd.xlane.f32.xlu0 %v414_v2  ;;  %v422_v3 = vmul.f32 %v414_v2, %v414_v2  ;;  %v415_v4 = vadd.f32 %v411_v1, %v72_v0 }
 0x213   :  { %424 = vadd.xlane.f32.xlu1 %v422_v3  ;;  %v423_v5 = vmul.f32 %v415_v4, %v415_v4 }
 0x215   :  { %418 = vadd.xlane.f32.xlu0 %v415_v4 }
 0x217   :  { %426 = vadd.xlane.f32.xlu1 %v423_v5 }
 0x29e   :  { %v417_v6 = vpop.xlane.xlu0 %416 }
 0x29f   :  { %v420_v7 = vmul.f32 0.0078125, %v417_v6 }
 0x2a0   :  { %v425_v8 = vpop.xlane.xlu1 %424 }
 0x2a1   :  { %v430_v9 = vmul.f32 %v420_v7, %v420_v7  ;;  %v428_v10 = vmul.f32 0.0078125, %v425_v8  ;;  %v434_v20 = vsub.f32 %v414_v2, %v420_v7 }
 0x2a2   :  { %v419_v11 = vpop.xlane.xlu0 %418 }
 0x2a3   :  { %v432_v12 = vsub.f32 %v428_v10, %v430_v9  ;;  %v421_v13 = vmul.f32 0.0078125, %v419_v11 }
 0x2a4   :  { %v427_v14 = vpop.xlane.xlu1 %426 }
 0x2a5   :  { %v436_v15 = vadd.f32 1e-05, %v432_v12  ;;  %v431_v16 = vmul.f32 %v421_v13, %v421_v13  ;;  %v429_v17 = vmul.f32 0.0078125, %v427_v14  ;;  %v435_v25 = vsub.f32 %v415_v4, %v421_v13 }
 0x2a7   :  { %587 = vrsqrt.f32 %v436_v15  ;;  %v433_v18 = vsub.f32 %v429_v17, %v431_v16 }
 0x2a9   :  { %v437_v19 = vadd.f32 1e-05, %v433_v18 }
 0x2ab   :  { %589 = vrsqrt.f32 %v437_v19 }
 0x2b1   :  { %v588_v21 = vpop.eup %587 }
 0x2b2   :  { %v440_v23 = vmul.f32 %v588_v21, %v434_v20 }
 0x2b4   :  { %v448_v26 = vmul.f32 %v512_v22, %v440_v23 }
 0x2b5   :  { %v590_v27 = vpop.eup %589 }
 0x2b6   :  { %v441_v28 = vmul.f32 %v590_v27, %v435_v25  ;;  %v456_v29 = vadd.f32 %v513_v24, %v448_v26 }
 0x2b8   :  { %v449_v30 = vmul.f32 %v512_v22, %v441_v28  ;;  %458 = vst [vmem:[#allocation8] sm:$0xff] %v456_v29 }
 0x2ba   :  { %v457_v31 = vadd.f32 %v513_v24, %v449_v30 }
 0x2bc   :  { %459 = vst [vmem:[#allocation8 + $0x8] sm:$0xff] %v457_v31 }
 0x2bd   :  { %668 = shalt.err (!%p665_p0)
}
 0x2be   :  { %s669_s25 = scalar_lea.hbm %s807_s7, 256 }
 0x2bf   :  { %p670_p1 = scmp.ne.s32.totalorder %s807_s7, %s669_s25  ;;  %p673_p2 = scmp.lt.u32.totalorder %s669_s25, %s807_s7 }
 0x2c1   :  { %p675_p3 = pnand %p673_p2, %p670_p1 }
 0x2c3   :  { %678 = shalt.err (!%p675_p3)
}
 0x2c4   :  { %471 = dma.vmem_to_hbm [thread:$0]  %s466_s24, 256, %s807_s7, [#allocation4], %s686_s11, %s686_s11, %s687_s12  }
 0x2c5   :  { %683 = dma.done.wait [#allocation4], 256  }
 0x2c6   :  { %684 = vsyncadd [#allocation4], 4294967040 }
 0x2c7   :  { %475 = vsyncpa [#allocation3], 1 }
 0x2c8   :  { %476 = vsyncpa [#allocation6], 1 }
 0x2c9   :  { %477 = vsyncpa [#allocation4], 1 }

</bundles_post_ra>
